<compile_context>
chip_gen: v5e
topology: v5e:2x2
jax: 0.10.0
libtpu: 0.0.40
codegen_flags: <defaults>
</compile_context>

<pallas_src>
import jax
import jax.numpy as jnp
from jax.experimental import pallas as pl
from jax.experimental.pallas import tpu as pltpu


def _self_attention_kernel(xk_ref, xq_ref, a_ref, c_ref, wv_ref, bv_ref,
                           gamma_ref, o_ref, v_scratch):
    # xk_ref: (C, N)  full feature map for this batch element (keys / values)
    # xq_ref: (C, TQ) query columns for this grid step
    # a_ref:  (C, C)  A = Wq^T Wk
    # c_ref:  (1, C)  c = (Wk^T bq)^T
    # wv_ref: (C, C), bv_ref: (C, 1), gamma_ref: (1,) in SMEM
    # o_ref:  (C, TQ) lane-dense output block
    # v_scratch: (C, N) f32 persistent VMEM scratch (value projection)
    x = xk_ref[...].astype(jnp.float32)          # (C, N)
    xq_cn = xq_ref[...].astype(jnp.float32)      # (C, TQ)

    # Value projection once per batch element (query-tile axis is the inner,
    # "arbitrary" grid axis, so qt == 0 marks the start of each batch element).
    @pl.when(pl.program_id(1) == 0)
    def _():
        v_scratch[...] = (
            jnp.dot(wv_ref[...], x, preferred_element_type=jnp.float32)
            + bv_ref[...])                       # (C, N)

    # Scores: S[i, j] = x_i^T A x_j + c . x_j   (softmax-equivalent to q_i.k_j)
    xq = xq_cn.T                                                        # (TQ, C) small in-VMEM transpose
    qa = jnp.dot(xq, a_ref[...], preferred_element_type=jnp.float32)    # (TQ, C)
    qa = qa + c_ref[...]
    s = jnp.dot(qa, x, preferred_element_type=jnp.float32)              # (TQ, N)

    # Softmax over j (lane axis).
    s = s - jnp.max(s, axis=-1, keepdims=True)
    e = jnp.exp(s)
    denom = jnp.sum(e, axis=-1, keepdims=True)
    inv = pl.reciprocal(denom, approx=True)      # EUP vrcp
    inv = inv * (2.0 - denom * inv)              # one Newton step -> ~f32 accuracy
    p = e * inv                                  # (TQ, N)

    # out[c, i] = sum_j v[c, j] * p[i, j]   (== V @ attn^T)
    out = jax.lax.dot_general(
        v_scratch[...], p, (((1,), (1,)), ((), ())),
        preferred_element_type=jnp.float32)      # (C, TQ)

    o_ref[...] = (gamma_ref[0] * out + xq_cn).astype(o_ref.dtype)


def _pick_query_tile(n):
    # Bound the (TQ, N) f32 score tile; prefer >=2 tiles so the once-per-batch
    # value-projection stash is exercised.  For larger N, size TQ against the
    # per-generation VMEM budget (v7x: 64 MiB physical / 32 MiB scoped default).
    for cand in (512, 256, 128):
        if n % cand == 0 and cand < n and cand * n * 4 <= (8 << 20):
            return cand
    return n


@jax.jit
def self_attention(x_nchw, wq, bq, wk, bk, wv, bv, gamma):
    B, C, H, W = x_nchw.shape
    N = H * W

    # NCHW -> (B, C, N) is a pure (free) reshape; no HBM transpose.
    x_cn = x_nchw.reshape(B, C, N)

    # Fold the Q/K projections (row-constant score terms cancel under softmax).
    a_mat = (wq.T @ wk).astype(jnp.float32)                 # (C, C)
    c_row = (wk.T @ bq).reshape(1, C).astype(jnp.float32)   # (1, C)
    wv32 = wv.astype(jnp.float32)                           # (C, C)
    bv_col = bv.reshape(C, 1).astype(jnp.float32)           # (C, 1)
    gamma_s = gamma.reshape(1).astype(jnp.float32)          # (1,) scalar in SMEM

    tq = _pick_query_tile(N)
    nq = N // tq

    out_cn = pl.pallas_call(
        _self_attention_kernel,
        out_shape=jax.ShapeDtypeStruct((B, C, N), x_nchw.dtype),
        grid_spec=pltpu.PrefetchScalarGridSpec(
            num_scalar_prefetch=0,
            grid=(B, nq),
            in_specs=[
                pl.BlockSpec((None, C, N), lambda b, q: (b, 0, 0)),    # x (keys/values)
                pl.BlockSpec((None, C, tq), lambda b, q: (b, 0, q)),   # x query columns
                pl.BlockSpec((C, C), lambda b, q: (0, 0)),             # A = Wq^T Wk
                pl.BlockSpec((1, C), lambda b, q: (0, 0)),             # c = (Wk^T bq)^T
                pl.BlockSpec((C, C), lambda b, q: (0, 0)),             # Wv
                pl.BlockSpec((C, 1), lambda b, q: (0, 0)),             # bv
                pl.BlockSpec(memory_space=pltpu.MemorySpace.SMEM),     # gamma (scalar)
            ],
            out_specs=pl.BlockSpec((None, C, tq), lambda b, q: (b, 0, q)),
            scratch_shapes=[pltpu.VMEM((C, N), jnp.float32)],          # value stash
        ),
        compiler_params=pltpu.CompilerParams(
            dimension_semantics=("parallel", "arbitrary"),
            vmem_limit_bytes=32 * 1024 * 1024),
    )(x_cn, x_cn, a_mat, c_row, wv32, bv_col, gamma_s)

    # (B, C, N) -> NCHW is again a free reshape.
    return out_cn.reshape(B, C, H, W)


def _reference(x_nchw, wq, bq, wk, bk, wv, bv, gamma):
    """Pure-JAX reference mirroring the PyTorch forward exactly."""
    B, C, H, W = x_nchw.shape
    N = H * W
    xf = x_nchw.reshape(B, C, N).astype(jnp.float32)                    # (B, C, N)
    q = jnp.einsum('oc,bcn->bon', wq, xf) + bq[None, :, None]           # (B, Ck, N)
    k = jnp.einsum('oc,bcn->bon', wk, xf) + bk[None, :, None]           # (B, Ck, N)
    v = jnp.einsum('oc,bcn->bon', wv, xf) + bv[None, :, None]           # (B, C, N)
    attn = jnp.einsum('bcn,bcm->bnm', q, k)                             # Q^T K: (B, N, N)
    attn = jax.nn.softmax(attn, axis=-1)
    out = jnp.einsum('bcm,bnm->bcn', v, attn)                           # V @ attn^T
    y = gamma[0] * out + xf
    return y.reshape(B, C, H, W).astype(x_nchw.dtype)


if __name__ == "__main__":
    key = jax.random.PRNGKey(0)
    B, C, H, W = 2, 32, 16, 16          # in_channels=32 -> query/key channels = 4
    Ck = C // 8

    k_x, k_wq, k_bq, k_wk, k_bk, k_wv, k_bv = jax.random.split(key, 7)
    x = jax.random.normal(k_x, (B, C, H, W), dtype=jnp.float32)

    def u(k, shape, fan_in):
        bound = 1.0 / jnp.sqrt(fan_in)
        return jax.random.uniform(k, shape, jnp.float32, -bound, bound)

    wq = u(k_wq, (Ck, C), C)
    bq = u(k_bq, (Ck,), C)
    wk = u(k_wk, (Ck, C), C)
    bk = u(k_bk, (Ck,), C)
    wv = u(k_wv, (C, C), C)
    bv = u(k_bv, (C,), C)
    # Module __init__ uses gamma = 0 (output == x); use a nonzero value so the
    # attention path is actually exercised and verified.
    gamma = jnp.array([0.5], dtype=jnp.float32)

    y = self_attention(x, wq, bq, wk, bk, wv, bv, gamma)
    jax.block_until_ready(y)

    y_ref = _reference(x, wq, bq, wk, bk, wv, bv, gamma)
    assert y.shape == x.shape
    # Slightly relaxed vs. strict 1e-4: the Wq^T Wk fold reassociates the score
    # sums and the softmax denominator uses approx reciprocal + one Newton step.
    assert jnp.allclose(y, y_ref, atol=5e-4, rtol=5e-4), float(jnp.max(jnp.abs(y - y_ref)))

    print("KERNEL_OK")
</pallas_src>

<mosaic_0001>
module attributes {stable_mosaic.version = 11 : i64} {
  func.func @_self_attention_kernel(%arg0: i32, %arg1: i32, %arg2: memref<1x32x256xf32, #tpu.memory_space<vmem>>, %arg3: memref<1x32x128xf32, #tpu.memory_space<vmem>>, %arg4: memref<32x32xf32, #tpu.memory_space<vmem>>, %arg5: memref<1x32xf32, #tpu.memory_space<vmem>>, %arg6: memref<32x32xf32, #tpu.memory_space<vmem>>, %arg7: memref<32x1xf32, #tpu.memory_space<vmem>>, %arg8: memref<1xf32, #tpu.memory_space<smem>>, %arg9: memref<1x32x128xf32, #tpu.memory_space<vmem>>, %arg10: memref<32x256xf32, #tpu.memory_space<vmem>>) attributes {dimension_semantics = [#tpu.dimension_semantics<parallel>, #tpu.dimension_semantics<arbitrary>], iteration_bounds = array<i64: 2, 2>, scalar_prefetch = 0 : i64, scratch_operands = 1 : i64, tpu.core_type = #tpu.core_type<tc>, window_params = [{transform_indices = @transform_0, window_bounds = array<i64: 1, 32, 256>}, {transform_indices = @transform_1, window_bounds = array<i64: 1, 32, 128>}, {pipeline_mode = #tpu.pipeline_mode<synchronous>, transform_indices = @transform_2, window_bounds = array<i64: 32, 32>}, {pipeline_mode = #tpu.pipeline_mode<synchronous>, transform_indices = @transform_3, window_bounds = array<i64: 1, 32>}, {pipeline_mode = #tpu.pipeline_mode<synchronous>, transform_indices = @transform_4, window_bounds = array<i64: 32, 32>}, {pipeline_mode = #tpu.pipeline_mode<synchronous>, transform_indices = @transform_5, window_bounds = array<i64: 32, 1>}, {transform_indices = @transform_6, window_bounds = array<i64: 1>}, {transform_indices = @transform_7, window_bounds = array<i64: 1, 32, 128>}]} {
    %c0 = arith.constant 0 : index
    %c0_0 = arith.constant 0 : index
    %c0_1 = arith.constant 0 : index
    %0 = vector.load %arg2[%c0, %c0_0, %c0_1] : memref<1x32x256xf32, #tpu.memory_space<vmem>>, vector<1x32x256xf32>
    %1 = vector.shape_cast %0 : vector<1x32x256xf32> to vector<32x256xf32>
    %c0_2 = arith.constant 0 : index
    %c0_3 = arith.constant 0 : index
    %c0_4 = arith.constant 0 : index
    %2 = vector.load %arg3[%c0_2, %c0_3, %c0_4] : memref<1x32x128xf32, #tpu.memory_space<vmem>>, vector<1x32x128xf32>
    %3 = vector.shape_cast %2 : vector<1x32x128xf32> to vector<32x128xf32>
    %c0_i32 = arith.constant 0 : i32
    %4 = arith.cmpi eq, %arg1, %c0_i32 : i32
    %5 = arith.extui %4 : i1 to i32
    %c0_i32_5 = arith.constant 0 : i32
    %6 = arith.cmpi ne, %5, %c0_i32_5 : i32
    scf.if %6 {
      %c0_21 = arith.constant 0 : index
      %c0_22 = arith.constant 0 : index
      %37 = vector.load %arg6[%c0_21, %c0_22] : memref<32x32xf32, #tpu.memory_space<vmem>>, vector<32x32xf32>
      %cst_23 = arith.constant dense<0.000000e+00> : vector<32x256xf32>
      %38 = tpu.matmul %37, %1, %cst_23 {dimension_numbers = #tpu.dot_dimension_numbers<[1], [0], [0], [1], [0, 0, 1, 1], [], []>} : vector<32x32xf32>, vector<32x256xf32>, vector<32x256xf32> -> vector<32x256xf32>
      %c0_24 = arith.constant 0 : index
      %c0_25 = arith.constant 0 : index
      %39 = vector.load %arg7[%c0_24, %c0_25] : memref<32x1xf32, #tpu.memory_space<vmem>>, vector<32x1xf32>
      %40 = vector.broadcast %39 : vector<32x1xf32> to vector<32x256xf32>
      %41 = arith.addf %38, %40 : vector<32x256xf32>
      %c0_26 = arith.constant 0 : index
      %c0_27 = arith.constant 0 : index
      %42 = vector.load %arg10[%c0_26, %c0_27] : memref<32x256xf32, #tpu.memory_space<vmem>>, vector<32x256xf32>
      tpu.vector_store %arg10[%c0_26, %c0_27], %41 {strides = array<i32>} : memref<32x256xf32, #tpu.memory_space<vmem>>, vector<32x256xf32>,
    } else {
    }
    %7 = tpu.transpose %3, [1, 0] : vector<32x128xf32> -> vector<128x32xf32>
    %c0_6 = arith.constant 0 : index
    %c0_7 = arith.constant 0 : index
    %8 = vector.load %arg4[%c0_6, %c0_7] : memref<32x32xf32, #tpu.memory_space<vmem>>, vector<32x32xf32>
    %cst = arith.constant dense<0.000000e+00> : vector<128x32xf32>
    %9 = tpu.matmul %7, %8, %cst {dimension_numbers = #tpu.dot_dimension_numbers<[1], [0], [0], [1], [0, 0, 1, 1], [], []>} : vector<128x32xf32>, vector<32x32xf32>, vector<128x32xf32> -> vector<128x32xf32>
    %c0_8 = arith.constant 0 : index
    %c0_9 = arith.constant 0 : index
    %10 = vector.load %arg5[%c0_8, %c0_9] : memref<1x32xf32, #tpu.memory_space<vmem>>, vector<1x32xf32>
    %11 = vector.broadcast %10 : vector<1x32xf32> to vector<128x32xf32>
    %12 = arith.addf %9, %11 : vector<128x32xf32>
    %cst_10 = arith.constant dense<0.000000e+00> : vector<128x256xf32>
    %13 = tpu.matmul %12, %1, %cst_10 {dimension_numbers = #tpu.dot_dimension_numbers<[1], [0], [0], [1], [0, 0, 1, 1], [], []>} : vector<128x32xf32>, vector<32x256xf32>, vector<128x256xf32> -> vector<128x256xf32>
    %cst_11 = arith.constant dense<0xFF800000> : vector<128xf32>
    %14 = vector.multi_reduction <maximumf>, %13, %cst_11 [1] : vector<128x256xf32> to vector<128xf32>
    %15 = vector.shape_cast %14 : vector<128xf32> to vector<128x1xf32>
    %16 = vector.broadcast %15 : vector<128x1xf32> to vector<128x256xf32>
    %17 = arith.subf %13, %16 : vector<128x256xf32>
    %18 = math.exp %17 : vector<128x256xf32>
    %cst_12 = arith.constant dense<0.000000e+00> : vector<128xf32>
    %19 = vector.multi_reduction <add>, %18, %cst_12 [1] : vector<128x256xf32> to vector<128xf32>
    %20 = vector.shape_cast %19 : vector<128xf32> to vector<128x1xf32>
    %21 = tpu.reciprocal %20 {approx = true} : vector<128x1xf32> -> vector<128x1xf32>
    %22 = arith.mulf %20, %21 : vector<128x1xf32>
    %cst_13 = arith.constant 2.000000e+00 : f32
    %23 = vector.broadcast %cst_13 : f32 to vector<128x1xf32>
    %24 = arith.subf %23, %22 : vector<128x1xf32>
    %25 = arith.mulf %21, %24 : vector<128x1xf32>
    %26 = vector.broadcast %25 : vector<128x1xf32> to vector<128x256xf32>
    %27 = arith.mulf %18, %26 : vector<128x256xf32>
    %c0_14 = arith.constant 0 : index
    %c0_15 = arith.constant 0 : index
    %28 = vector.load %arg10[%c0_14, %c0_15] : memref<32x256xf32, #tpu.memory_space<vmem>>, vector<32x256xf32>
    %cst_16 = arith.constant dense<0.000000e+00> : vector<32x128xf32>
    %29 = tpu.matmul %28, %27, %cst_16 {dimension_numbers = #tpu.dot_dimension_numbers<[1], [1], [0], [0], [0, 0, 1, 0], [], []>} : vector<32x256xf32>, vector<128x256xf32>, vector<32x128xf32> -> vector<32x128xf32>
    %c0_17 = arith.constant 0 : index
    %30 = memref.load %arg8[%c0_17] : memref<1xf32, #tpu.memory_space<smem>>
    %31 = vector.broadcast %30 : f32 to vector<32x128xf32>
    %32 = arith.mulf %31, %29 : vector<32x128xf32>
    %33 = arith.addf %32, %3 : vector<32x128xf32>
    %c0_18 = arith.constant 0 : index
    %c0_19 = arith.constant 0 : index
    %c0_20 = arith.constant 0 : index
    %34 = vector.load %arg9[%c0_18, %c0_19, %c0_20] : memref<1x32x128xf32, #tpu.memory_space<vmem>>, vector<1x32x128xf32>
    %35 = vector.shape_cast %34 : vector<1x32x128xf32> to vector<32x128xf32>
    %36 = vector.shape_cast %33 : vector<32x128xf32> to vector<1x32x128xf32>
    tpu.vector_store %arg9[%c0_18, %c0_19, %c0_20], %36 {strides = array<i32>} : memref<1x32x128xf32, #tpu.memory_space<vmem>>, vector<1x32x128xf32>,
    return
  }
  func.func @transform_0(%arg0: i32, %arg1: i32) -> (i32, i32, i32) {
    %c0_i32 = arith.constant 0 : i32
    %c0_i32_0 = arith.constant 0 : i32
    %c0_i32_1 = arith.constant 0 : i32
    return %arg0, %c0_i32, %c0_i32_0 : i32, i32, i32
  }
  func.func @transform_1(%arg0: i32, %arg1: i32) -> (i32, i32, i32) {
    %c0_i32 = arith.constant 0 : i32
    %c0_i32_0 = arith.constant 0 : i32
    return %arg0, %c0_i32, %arg1 : i32, i32, i32
  }
  func.func @transform_2(%arg0: i32, %arg1: i32) -> (i32, i32) {
    %c0_i32 = arith.constant 0 : i32
    %c0_i32_0 = arith.constant 0 : i32
    %c0_i32_1 = arith.constant 0 : i32
    return %c0_i32, %c0_i32_0 : i32, i32
  }
  func.func @transform_3(%arg0: i32, %arg1: i32) -> (i32, i32) {
    %c0_i32 = arith.constant 0 : i32
    %c0_i32_0 = arith.constant 0 : i32
    %c0_i32_1 = arith.constant 0 : i32
    return %c0_i32, %c0_i32_0 : i32, i32
  }
  func.func @transform_4(%arg0: i32, %arg1: i32) -> (i32, i32) {
    %c0_i32 = arith.constant 0 : i32
    %c0_i32_0 = arith.constant 0 : i32
    %c0_i32_1 = arith.constant 0 : i32
    return %c0_i32, %c0_i32_0 : i32, i32
  }
  func.func @transform_5(%arg0: i32, %arg1: i32) -> (i32, i32) {
    %c0_i32 = arith.constant 0 : i32
    %c0_i32_0 = arith.constant 0 : i32
    %c0_i32_1 = arith.constant 0 : i32
    return %c0_i32, %c0_i32_0 : i32, i32
  }
  func.func @transform_6(%arg0: i32, %arg1: i32) -> i32 {
    %c0_i32 = arith.constant 0 : i32
    %c0_i32_0 = arith.constant 0 : i32
    return %c0_i32 : i32
  }
  func.func @transform_7(%arg0: i32, %arg1: i32) -> (i32, i32, i32) {
    %c0_i32 = arith.constant 0 : i32
    %c0_i32_0 = arith.constant 0 : i32
    return %arg0, %c0_i32, %arg1 : i32, i32, i32
  }
}

</mosaic_0001>

<bundles_post_ra>
// kernel: self_attention.1
= control target key start
LH: loop header
LB: loop body
LE: loop exit
PB: predicated region body
PF: predicated region fallthrough
CT: control target
= control target key end

     0   :  { %s2217_s0 = inlined_call_operand.vmem [shape: f32[2,32,256], index: 0, kind: input, shape index: {}, may-alias: {0,1}]   ;;  %s2218_s1 = inlined_call_operand.vmem [shape: f32[2,32,256], index: 1, kind: input, shape index: {}, may-alias: {0,1}]   ;;  %s2219_s2 = inlined_call_operand.vmem [shape: f32[32,32], index: 2, kind: input, shape index: {}]   ;;  %s2220_s3 = inlined_call_operand.vmem [shape: f32[1,32], index: 3, kind: input, shape index: {}]   ;;  %s2221_s4 = inlined_call_operand.vmem [shape: f32[32,32], index: 4, kind: input, shape index: {}]   ;;  %s2222_s5 = inlined_call_operand.vmem [shape: f32[32,1], index: 5, kind: input, shape index: {}]   ;;  %s2223_s6 = inlined_call_operand.<no memory space> [shape: f32[1], index: 6, kind: input, shape index: {}]   ;;  %s2224_s7 = inlined_call_operand.vmem [shape: f32[2,32,256], index: 7, kind: output, shape index: {}]  }
   0x1   :  { %12 = sst [smem:[#allocation3]] %s2223_s6 }
   0x2   :  { %s1682_s26 = smov 0   ;;  %s1684_s27 = smov 0  }
   0x3   :  { %s1686_s28 = smov 0   ;;  %s1688_s29 = smov 0  }
   0x4   :  { %s1690_s30 = smov 0   ;;  %s1692_s8 = smov 0  }
   0x5   :  { %s1694_s9 = smov 0  }
   0x6 LB: > { %s27_s6 = sadd.s32 1, %s1628_s30  ;;  %s30_s10 = sadd.s32 1, %s1632_s8  ;;  %s1636_s9 = sphi %s1694_s9, %s18_s9   ;;  %s1632_s8 = sphi %s1692_s8, %s2231_s8   ;;  %s1628_s30 = sphi %s1690_s30, %s2230_s30   ;;  %s1624_s29 = sphi %s1688_s29, %s2229_s29   ;;  %s1620_s28 = sphi %s1686_s28, %s2228_s28   ;;  %s1616_s27 = sphi %s1684_s27, %s2227_s27   ;;  %s1612_s26 = sphi %s1682_s26, %s2226_s26  }
   0x7   : > { %p28_p0 = scmp.ge.s32.totalorder %s27_s6, 2  ;;  %s1322_s11 = sadd.s32 4294967295, %s1636_s9  }
   0x8   : > { %p72_p1 = scmp.ne.s32.totalorder %s1616_s27, %s1612_s26  ;;  %p73_p2 = scmp.eq.s32.totalorder %s1636_s9, 0 }
   0x9   : > { %s2233_s6 = smov (%p28_p0, %s27_s6), 0  ;;  %s2235_s10 = smov (!%p28_p0, %s30_s10), %s1632_s8 }
   0xa   : > { %p32_p3 = scmp.ge.s32.totalorder %s2235_s10, 2  ;;  %p209_p4 = scmp.eq.s32.totalorder %s1322_s11, 3 }
   0xb   : > { %s61_s12 = ssub.s32 %s1628_s30, %s2233_s6  ;;  %p74_p5 = por %p73_p2, %p72_p1 }
   0xc   : > { %s2237_s10 = smov (%p32_p3, %s2235_s10), 0  ;;  %p1730_p6 = por %p209_p4, %p72_p1 }
   0xd   : > { %s60_s14 = ssub.s32 %s1632_s8, %s2237_s10  ;;  %s65_s16 = sadd.s32 1, %s1616_s27 }
   0xe   : > { %s62_s15 = sor.u32 %s61_s12, %s60_s14  ;;  %p1325_p8 = scmp.ge.s32.totalorder %s1636_s9, 4 }
   0xf   : > { %p63_p7 = scmp.eq.s32.totalorder %s62_s15, 0 }
  0x10   : > { %246 = sbr.rel (%p1325_p8) target bundleno = 31 (0x1f), region = 36 }
  0x11   : > { %s1738_s17 = scalar_select %p63_p7, %s1616_s27, %s65_s16  }
  0x15   : > { %257 = sbr.rel (!%p74_p5) target bundleno = 31 (0x1f), region = 44  ;;  %s259_s18 = sand.u32 (%p74_p5), 1, %s1616_s27  }
  0x16   : > { %s1327_s19 = sshll.u32 (%p74_p5), %s1632_s8, 3  ;;  %s1326_s20 = sshll.u32 (%p74_p5), %s259_s18, 5 }
  0x17   : > { %s263_s21 = sadd.s32 (%p74_p5), %s1628_s30, %s1327_s19  ;;  %s261_s11 = scalar_lea.vmem (%p74_p5), [#allocation4], %s1326_s20 }
  0x18   : > { %s1328_s22 = sshll.u32 (%p74_p5), %s263_s21, 3 }
  0x19   : > { %s265_s25 = scalar_lea.vmem (%p74_p5), %s2218_s1, %s1328_s22 }
  0x1a   : > { %v300_v0 = vld [vmem:[%s265_s25] sm:$0xff]  ;;  %v302_v1 = vld [vmem:[%s265_s25 + $0x10] sm:$0xff] }
  0x1b   : > { %v304_v2 = vld [vmem:[%s265_s25 + $0x20] sm:$0xff]  ;;  %301 = vst [vmem:[%s261_s11] sm:$0xff] %v300_v0  ;;  %v306_v3 = vld [vmem:[%s265_s25 + $0x30] sm:$0xff] }
  0x1c   : > { %303 = vst [vmem:[%s261_s11 + $0x8] sm:$0xff] %v302_v1 }
  0x1d   : > { %305 = vst [vmem:[%s261_s11 + $0x10] sm:$0xff] %v304_v2 }
  0x1e   : > { %307 = vst [vmem:[%s261_s11 + $0x18] sm:$0xff] %v306_v3 }
  0x1f PF: > { %p1329_p9 = scmp.ge.s32.totalorder %s1636_s9, 1  ;;  %p312_p10 = scmp.lt.s32.totalorder %s1636_s9, 5 }
  0x21   : > { %p313_p11 = pnand %p1329_p9, %p312_p10 }
  0x22   : > { %s319_s12 = sand.u32 (!%p313_p11), 1, %s1612_s26   ;;  %p354_p12 = scmp.lt.s32.totalorder (!%p313_p11), %s1624_s29, 1 }
  0x23   : > { %316 = sbr.rel (%p313_p11) target bundleno = 1307 (0x51b), region = 82  ;;  %s1330_s14 = sshll.u32 (!%p313_p11), %s319_s12, 5 }
  0x24   : > { %s321_s16 = scalar_lea.vmem (!%p313_p11), [#allocation4], %s1330_s14  ;;  %s1779_s26 = scalar_lea.vmem (!%p313_p11), [#allocation5], %s1330_s14 }
  0x25   : > { %p1334_p13 = scmp.ne.s32.totalorder (!%p313_p11), %s1620_s28, 0 }
  0x28   : > { %s355_s15 = scalar_select %p354_p12, %s1624_s29, 1  ;;  %v1752_v4 = vld [vmem:[%s321_s16] sm:$0xff]  ;;  %v1754_v5 = vld [vmem:[%s321_s16 + $0x8] sm:$0xff]  ;;  %v1756_v6 = vld [vmem:[%s321_s16 + $0x10] sm:$0xff] }
  0x29   : > { %v1758_v7 = vld [vmem:[%s321_s16 + $0x18] sm:$0xff] }
  0x2a   : > { %s1396_s18 = sshll.u32 %s355_s15, 6  ;;  %374 = sbr.rel (%p1334_p13) target bundleno = 199 (0xc7), region = 90 }
  0x2b   : > { %s358_s21 = scalar_lea.vmem %s2217_s0, %s1396_s18 }
  0x2c   : > { %v1763_v8 = vld [vmem:[%s358_s21] sm:$0xff]  ;;  %v1765_v9 = vld [vmem:[%s358_s21 + $0x8] sm:$0xff]  ;;  %v1767_v10 = vld [vmem:[%s358_s21 + $0x10] sm:$0xff] }
  0x2d   : > { %v1769_v11 = vld [vmem:[%s358_s21 + $0x18] sm:$0xff]  ;;  %v1771_v12 = vld [vmem:[%s358_s21 + $0x20] sm:$0xff]  ;;  %v1773_v13 = vld [vmem:[%s358_s21 + $0x28] sm:$0xff] }
  0x2e   : > { %v1775_v14 = vld [vmem:[%s358_s21 + $0x30] sm:$0xff]  ;;  %v1777_v15 = vld [vmem:[%s358_s21 + $0x38] sm:$0xff] }
  0x2f   : > { %428 = vmatpush.msra.mxu0 %v1775_v14  ;;  %1397 = vmatpush.msra.mxu2 %v1775_v14  ;;  %v375_v16 = vld [vmem:[%s2221_s4] sm:$0xff]  ;;  %vm403_vm0 = vcmask 261120   ;;  %v377_v17 = vld [vmem:[%s2221_s4 + $0x10] sm:$0xff]  ;;  %v1638_v20 = vmov 0   ;;  %v376_v21 = vld [vmem:[%s2221_s4 + $0x8] sm:$0xff] }
  0x30   : > { %457 = vmatpush.msra.mxu1 %v1777_v15  ;;  %1401 = vmatpush.msra.mxu3 %v1777_v15  ;;  %v381_v18 = vld [vmem:[%s2222_s5 + $0x10] sm:$0xff]  ;;  %v379_v19 = vld [vmem:[%s2222_s5] sm:$0xff]  ;;  %v378_v22 = vld [vmem:[%s2221_s4 + $0x18] sm:$0xff] }
  0x31   : > { %429 = vmatpush.msra.mxu0 %v1771_v12  ;;  %1398 = vmatpush.msra.mxu2 %v1771_v12  ;;  %v382_v23 = vld [vmem:[%s2222_s5 + $0x18] sm:$0xff]  ;;  %v380_v24 = vld [vmem:[%s2222_s5 + $0x8] sm:$0xff] }
  0x32   : > { %458 = vmatpush.msra.mxu1 %v1773_v13  ;;  %1402 = vmatpush.msra.mxu3 %v1773_v13 }
  0x33   : > { %430 = vmatpush.msra.mxu0 %v1767_v10  ;;  %1399 = vmatpush.msra.mxu2 %v1767_v10 }
  0x34   : > { %459 = vmatpush.msra.mxu1 %v1769_v11  ;;  %1403 = vmatpush.msra.mxu3 %v1769_v11 }
  0x35   : > { %431 = vmatpush.msra.mxu0 %v1763_v8  ;;  %1400 = vmatpush.msra.mxu2 %v1763_v8 }
  0x36   : > { %460 = vmatpush.msra.mxu1 %v1765_v9  ;;  %1404 = vmatpush.msra.mxu3 %v1765_v9 }
  0x37   : > { %1335 = vmatmul.msk.f32.vlgmr.msra.gmra.mxu0 %vm403_vm0, %v375_v16  ;;  %1337 = vmatmul.msk.f32.vlgmr.msra.gmra.mxu2 %vm403_vm0, %v377_v17 }
  0x38   : > { %1339 = vmatmul.msk.f32.vlgmr.msra.gmra.mxu1 %vm403_vm0, %v375_v16  ;;  %1341 = vmatmul.msk.f32.vlgmr.msra.gmra.mxu3 %vm403_vm0, %v377_v17 }
  0x39   : > { %1484 = vset.pattern.permute.xlu1 %v1638_v20  ;;  %1483 = vset.pattern.permute.xlu0 %v1638_v20 }
  0x3a   : > { %395 = vperm.xlu1 %1484, %v381_v18   ;;  %385 = vperm.xlu0 %1483, %v379_v19  }
  0x3f   : > { %1336 = vmatmul.msk.f32.gmra.mxu0 %vm403_vm0, %v376_v21  ;;  %1338 = vmatmul.msk.f32.gmra.mxu2 %vm403_vm0, %v378_v22 }
  0x40   : > { %1340 = vmatmul.msk.f32.gmra.mxu1 %vm403_vm0, %v376_v21  ;;  %1342 = vmatmul.msk.f32.gmra.mxu3 %vm403_vm0, %v378_v22 }
  0x42   : > { %400 = vperm.xlu1 %1484, %v382_v23   ;;  %390 = vperm.xlu0 %1483, %v380_v24  }
  0xac   : > { %v386_v25 = vpop.permute.xlu0 %385  ;;  %v396_v30 = vpop.permute.xlu1 %395 }
  0xb4   : > { %v433_v26 = vpop.f32.mrf.mxu0  ;;  %v391_v34 = vpop.permute.xlu0 %390 }
  0xb5   : > { %v434_v27 = vadd.f32 %v433_v26, %v386_v25  ;;  %v462_v28 = vpop.f32.mrf.mxu1  ;;  %v401_v40 = vpop.permute.xlu1 %400 }
  0xb6   : > { %v463_v29 = vadd.f32 %v462_v28, %v386_v25 }
  0xb7   : > { %474 = vst [vmem:[#allocation2 + $0x30] sm:$0xff] %v434_v27 }
  0xb8   : > { %475 = vst [vmem:[#allocation2] sm:$0xff] %v463_v29 }
  0xba   : > { %v439_v31 = vpop.f32.mrf.mxu2 }
  0xbb   : > { %v440_v32 = vadd.f32 %v439_v31, %v396_v30  ;;  %v468_v33 = vpop.f32.mrf.mxu3 }
  0xbc   : > { %v469_v35 = vadd.f32 %v468_v33, %v396_v30  ;;  %v436_v36 = vpop.f32.mrf.mxu0 }
  0xbd   : > { %478 = vst [vmem:[#allocation2 + $0x8] sm:$0xff] %v440_v32  ;;  %v437_v37 = vadd.f32 %v436_v36, %v391_v34  ;;  %v465_v38 = vpop.f32.mrf.mxu1 }
  0xbe   : > { %479 = vst [vmem:[#allocation2 + $0x20] sm:$0xff] %v469_v35  ;;  %v466_v39 = vadd.f32 %v465_v38, %v391_v34 }
  0xbf   : > { %476 = vst [vmem:[#allocation2 + $0x18] sm:$0xff] %v437_v37 }
  0xc0   : > { %477 = vst [vmem:[#allocation2 + $0x10] sm:$0xff] %v466_v39 }
  0xc2   : > { %v442_v41 = vpop.f32.mrf.mxu2 }
  0xc3   : > { %v443_v42 = vadd.f32 %v442_v41, %v401_v40  ;;  %v471_v43 = vpop.f32.mrf.mxu3 }
  0xc4   : > { %v472_v44 = vadd.f32 %v471_v43, %v401_v40 }
  0xc5   : > { %480 = vst [vmem:[#allocation2 + $0x28] sm:$0xff] %v443_v42 }
  0xc6   : > { %481 = vst [vmem:[#allocation2 + $0x38] sm:$0xff] %v472_v44 }
  0xc7 PF: > { %482 = vxpose.xlu0.b32.start [1/4] (short) %v1752_v4, 128  ;;  %v517_v45 = vld [vmem:[%s2219_s2 + $0x18] sm:$0xff]  ;;  %v516_v46 = vld [vmem:[%s2219_s2 + $0x10] sm:$0xff]  ;;  %761 = vmatpush.msra.mxu2 %v1777_v15  ;;  %v515_v47 = vld [vmem:[%s2219_s2 + $0x8] sm:$0xff]  ;;  %vm522_vm1 = vcmask 261120   ;;  %s1168_s22 = sld [smem:[#allocation3]]  ;;  %s1392_s23 = sshll.u32 (%p1730_p6), %s1624_s29, 3 }
  0xc8   : > { %583 = vmatpush.msra.mxu0 %v517_v45  ;;  %1405 = vmatpush.msra.mxu1 %v517_v45  ;;  %v514_v48 = vld [vmem:[%s2219_s2] sm:$0xff]  ;;  %s1190_s24 = sadd.s32 (%p1730_p6), %s1620_s28, %s1392_s23 }
  0xc9   : > { %762 = vmatpush.msra.mxu2 %v1773_v13  ;;  %v1485_v1 = vld [vmem:[%s2220_s3] ss:$0 sm:$0xff]  ;;  %s1393_s25 = sshll.u32 (%p1730_p6), %s1190_s24, 3 }
  0xca   : > { %584 = vmatpush.msra.mxu0 %v516_v46  ;;  %1406 = vmatpush.msra.mxu1 %v516_v46  ;;  %s1192_s14 = scalar_lea.vmem (%p1730_p6), %s2224_s7, %s1393_s25 }
  0xcb   : > { %763 = vmatpush.msra.mxu2 %v1769_v11 }
  0xcc   : > { %585 = vmatpush.msra.mxu0 %v515_v47  ;;  %1407 = vmatpush.msra.mxu1 %v515_v47 }
  0xcd   : > { %764 = vmatpush.msra.mxu2 %v1765_v9 }
  0xce   : > { %586 = vmatpush.msra.mxu0 %v514_v48  ;;  %1408 = vmatpush.msra.mxu1 %v514_v48 }
  0xcf   : > { %483 = vxpose.xlu0.b32.cont [2/4] (short) %v1754_v5, 128 }
  0xd0   : > { %696 = vmatpush.msrb.mxu1 %v1775_v14 }
  0xd2   : > { %697 = vmatpush.msrb.mxu1 %v1771_v12 }
  0xd4   : > { %698 = vmatpush.msrb.mxu1 %v1767_v10 }
  0xd6   : > { %699 = vmatpush.msrb.mxu1 %v1763_v8 }
  0xd7   : > { %484 = vxpose.xlu0.b32.cont [3/4] (short) %v1756_v6, 128 }
  0xdf   : > { %485 = vxpose.xlu0.b32.end [4/4] (short) %v1758_v7, 128 }
 0x16b   : > { %v498_v49 = vpop.trf.xlu0 }
 0x16c   : > { %1343 = vmatmul.msk.f32.vlgmr.msra.gmra.mxu0 %vm522_vm1, %v498_v49 }
 0x173   : > { %v499_v50 = vpop.trf.xlu0 }
 0x174   : > { %1344 = vmatmul.msk.f32.gmra.mxu0 %vm522_vm1, %v499_v50 }
 0x17b   : > { %v500_v51 = vpop.trf.xlu0 }
 0x17c   : > { %1345 = vmatmul.msk.f32.gmra.mxu0 %vm522_vm1, %v500_v51 }
 0x183   : > { %v501_v52 = vpop.trf.xlu0 }
 0x184   : > { %1346 = vmatmul.msk.f32.gmra.mxu0 %vm522_vm1, %v501_v52 }
 0x18b   : > { %v502_v53 = vpop.trf.xlu0 }
 0x18c   : > { %1347 = vmatmul.msk.f32.gmra.mxu0 %vm522_vm1, %v502_v53 }
 0x193   : > { %v503_v54 = vpop.trf.xlu0 }
 0x194   : > { %1348 = vmatmul.msk.f32.gmra.mxu0 %vm522_vm1, %v503_v54 }
 0x19b   : > { %v504_v55 = vpop.trf.xlu0 }
 0x19c   : > { %1349 = vmatmul.msk.f32.gmra.mxu0 %vm522_vm1, %v504_v55 }
 0x1a3   : > { %v505_v56 = vpop.trf.xlu0 }
 0x1a4   : > { %1350 = vmatmul.msk.f32.gmra.mxu0 %vm522_vm1, %v505_v56 }
 0x1ab   : > { %v506_v57 = vpop.trf.xlu0 }
 0x1ac   : > { %1351 = vmatmul.msk.f32.gmra.mxu0 %vm522_vm1, %v506_v57 }
 0x1b3   : > { %v507_v58 = vpop.trf.xlu0 }
 0x1b4   : > { %1352 = vmatmul.msk.f32.gmra.mxu0 %vm522_vm1, %v507_v58 }
 0x1bb   : > { %v508_v59 = vpop.trf.xlu0 }
 0x1bc   : > { %1353 = vmatmul.msk.f32.gmra.mxu0 %vm522_vm1, %v508_v59 }
 0x1c3   : > { %v509_v60 = vpop.trf.xlu0 }
 0x1c4   : > { %1354 = vmatmul.msk.f32.gmra.mxu0 %vm522_vm1, %v509_v60 }
 0x1cb   : > { %v510_v61 = vpop.trf.xlu0 }
 0x1cc   : > { %1355 = vmatmul.msk.f32.gmra.mxu0 %vm522_vm1, %v510_v61 }
 0x1d3   : > { %v511_v62 = vpop.trf.xlu0 }
 0x1d4   : > { %1356 = vmatmul.msk.f32.gmra.mxu0 %vm522_vm1, %v511_v62 }
 0x1db   : > { %v512_v63 = vpop.trf.xlu0 }
 0x1dc   : > { %1357 = vmatmul.msk.f32.gmra.mxu0 %vm522_vm1, %v512_v63 }
 0x1e3   : > { %v513_v0 = vpop.trf.xlu0 }
 0x1e4   : > { %1358 = vmatmul.msk.f32.vlgmr.msra.gmra.mxu1 %vm522_vm1, %v513_v0 }
 0x1e9   : > { %v588_v2 = vpop.f32.mrf.mxu0 }
 0x1ea   : > { %v589_v3 = vadd.f32 %v1485_v1, %v588_v2 }
 0x1ec   : > { %1359 = vmatmul.msk.f32.vlgmr.msrb.gmra.mxu1 %vm522_vm1, %v589_v3  ;;  %1375 = vmatmul.msk.f32.vlgmr.msra.gmra.mxu2 %vm522_vm1, %v589_v3 }
 0x1f1   : > { %v591_v8 = vpop.f32.mrf.mxu0 }
 0x1f2   : > { %v592_v9 = vadd.f32 %v1485_v1, %v591_v8 }
 0x1f4   : > { %1360 = vmatmul.msk.f32.gmra.mxu1 %vm522_vm1, %v592_v9  ;;  %1376 = vmatmul.msk.f32.gmra.mxu2 %vm522_vm1, %v592_v9 }
 0x1f9   : > { %v594_v10 = vpop.f32.mrf.mxu0 }
 0x1fa   : > { %v595_v11 = vadd.f32 %v1485_v1, %v594_v10 }
 0x1fc   : > { %1361 = vmatmul.msk.f32.gmra.mxu1 %vm522_vm1, %v595_v11  ;;  %1377 = vmatmul.msk.f32.gmra.mxu2 %vm522_vm1, %v595_v11 }
 0x201   : > { %v597_v12 = vpop.f32.mrf.mxu0 }
 0x202   : > { %v598_v13 = vadd.f32 %v1485_v1, %v597_v12 }
 0x204   : > { %1362 = vmatmul.msk.f32.gmra.mxu1 %vm522_vm1, %v598_v13  ;;  %1378 = vmatmul.msk.f32.gmra.mxu2 %vm522_vm1, %v598_v13 }
 0x209   : > { %v600_v14 = vpop.f32.mrf.mxu0 }
 0x20a   : > { %v601_v15 = vadd.f32 %v1485_v1, %v600_v14 }
 0x20c   : > { %1363 = vmatmul.msk.f32.gmra.mxu1 %vm522_vm1, %v601_v15  ;;  %1379 = vmatmul.msk.f32.gmra.mxu2 %vm522_vm1, %v601_v15 }
 0x211   : > { %v603_v16 = vpop.f32.mrf.mxu0 }
 0x212   : > { %v604_v17 = vadd.f32 %v1485_v1, %v603_v16 }
 0x214   : > { %1364 = vmatmul.msk.f32.gmra.mxu1 %vm522_vm1, %v604_v17  ;;  %1380 = vmatmul.msk.f32.gmra.mxu2 %vm522_vm1, %v604_v17 }
 0x219   : > { %v606_v18 = vpop.f32.mrf.mxu0 }
 0x21a   : > { %v607_v19 = vadd.f32 %v1485_v1, %v606_v18 }
 0x21c   : > { %1365 = vmatmul.msk.f32.gmra.mxu1 %vm522_vm1, %v607_v19  ;;  %1381 = vmatmul.msk.f32.gmra.mxu2 %vm522_vm1, %v607_v19 }
 0x221   : > { %v609_v20 = vpop.f32.mrf.mxu0 }
 0x222   : > { %v610_v21 = vadd.f32 %v1485_v1, %v609_v20 }
 0x224   : > { %1366 = vmatmul.msk.f32.gmra.mxu1 %vm522_vm1, %v610_v21  ;;  %1382 = vmatmul.msk.f32.gmra.mxu2 %vm522_vm1, %v610_v21 }
 0x229   : > { %v612_v22 = vpop.f32.mrf.mxu0 }
 0x22a   : > { %v613_v23 = vadd.f32 %v1485_v1, %v612_v22 }
 0x22c   : > { %1367 = vmatmul.msk.f32.gmra.mxu1 %vm522_vm1, %v613_v23  ;;  %1383 = vmatmul.msk.f32.gmra.mxu2 %vm522_vm1, %v613_v23 }
 0x231   : > { %v615_v24 = vpop.f32.mrf.mxu0 }
 0x232   : > { %v616_v25 = vadd.f32 %v1485_v1, %v615_v24 }
 0x234   : > { %1368 = vmatmul.msk.f32.gmra.mxu1 %vm522_vm1, %v616_v25  ;;  %1384 = vmatmul.msk.f32.gmra.mxu2 %vm522_vm1, %v616_v25 }
 0x239   : > { %v618_v26 = vpop.f32.mrf.mxu0 }
 0x23a   : > { %v619_v27 = vadd.f32 %v1485_v1, %v618_v26 }
 0x23c   : > { %1369 = vmatmul.msk.f32.gmra.mxu1 %vm522_vm1, %v619_v27  ;;  %1385 = vmatmul.msk.f32.gmra.mxu2 %vm522_vm1, %v619_v27 }
 0x241   : > { %v621_v28 = vpop.f32.mrf.mxu0 }
 0x242   : > { %v622_v29 = vadd.f32 %v1485_v1, %v621_v28 }
 0x244   : > { %1370 = vmatmul.msk.f32.gmra.mxu1 %vm522_vm1, %v622_v29  ;;  %1386 = vmatmul.msk.f32.gmra.mxu2 %vm522_vm1, %v622_v29 }
 0x249   : > { %v624_v30 = vpop.f32.mrf.mxu0 }
 0x24a   : > { %v625_v31 = vadd.f32 %v1485_v1, %v624_v30 }
 0x24c   : > { %1371 = vmatmul.msk.f32.gmra.mxu1 %vm522_vm1, %v625_v31  ;;  %1387 = vmatmul.msk.f32.gmra.mxu2 %vm522_vm1, %v625_v31 }
 0x251   : > { %v627_v32 = vpop.f32.mrf.mxu0 }
 0x252   : > { %v628_v33 = vadd.f32 %v1485_v1, %v627_v32 }
 0x254   : > { %1372 = vmatmul.msk.f32.gmra.mxu1 %vm522_vm1, %v628_v33  ;;  %1388 = vmatmul.msk.f32.gmra.mxu2 %vm522_vm1, %v628_v33 }
 0x259   : > { %v630_v34 = vpop.f32.mrf.mxu0 }
 0x25a   : > { %v631_v35 = vadd.f32 %v1485_v1, %v630_v34 }
 0x25c   : > { %1373 = vmatmul.msk.f32.gmra.mxu1 %vm522_vm1, %v631_v35  ;;  %1389 = vmatmul.msk.f32.gmra.mxu2 %vm522_vm1, %v631_v35 }
 0x261   : > { %v633_v36 = vpop.f32.mrf.mxu1 }
 0x262   : > { %v634_v37 = vadd.f32 %v1485_v1, %v633_v36 }
 0x264   : > { %1374 = vmatmul.msk.f32.gmra.mxu1 %vm522_vm1, %v634_v37  ;;  %1390 = vmatmul.msk.f32.gmra.mxu2 %vm522_vm1, %v634_v37 }
 0x269   : > { %v1905_v38 = vpop.f32.mrf.mxu1 }
 0x26f   : > { %v1907_v39 = vpop.f32.mrf.mxu2 }
 0x270   : > { %v814_v25 = vmax.f32 %v1905_v38, %v1907_v39 }
 0x271   : > { %v1909_v40 = vpop.f32.mrf.mxu1 }
 0x277   : > { %v1911_v41 = vpop.f32.mrf.mxu2 }
 0x278   : > { %v817_v24 = vmax.f32 %v1909_v40, %v1911_v41 }
 0x279   : > { %v1913_v42 = vpop.f32.mrf.mxu1 }
 0x27f   : > { %v1915_v43 = vpop.f32.mrf.mxu2 }
 0x280   : > { %v820_v23 = vmax.f32 %v1913_v42, %v1915_v43 }
 0x281   : > { %v1917_v44 = vpop.f32.mrf.mxu1 }
 0x287   : > { %v1919_v45 = vpop.f32.mrf.mxu2 }
 0x288   : > { %v823_v19 = vmax.f32 %v1917_v44, %v1919_v45 }
 0x289   : > { %v1921_v46 = vpop.f32.mrf.mxu1 }
 0x28f   : > { %v1923_v47 = vpop.f32.mrf.mxu2 }
 0x290   : > { %v826_v22 = vmax.f32 %v1921_v46, %v1923_v47 }
 0x291   : > { %v1925_v48 = vpop.f32.mrf.mxu1 }
 0x297   : > { %v1927_v49 = vpop.f32.mrf.mxu2 }
 0x298   : > { %v829_v17 = vmax.f32 %v1925_v48, %v1927_v49 }
 0x299   : > { %v1929_v50 = vpop.f32.mrf.mxu1 }
 0x29f   : > { %v1931_v51 = vpop.f32.mrf.mxu2 }
 0x2a0   : > { %v832_v21 = vmax.f32 %v1929_v50, %v1931_v51 }
 0x2a1   : > { %v1933_v52 = vpop.f32.mrf.mxu1 }
 0x2a7   : > { %v1935_v53 = vpop.f32.mrf.mxu2 }
 0x2a8   : > { %v835_v54 = vmax.f32 %v1933_v52, %v1935_v53 }
 0x2a9   : > { %v1939_v55 = vpop.f32.mrf.mxu1 }
 0x2aa   : > { %836 = vmax.xlane.f32.xlu0 %v835_v54 }
 0x2af   : > { %v1941_v56 = vpop.f32.mrf.mxu2 }
 0x2b0   : > { %v838_v15 = vmax.f32 %v1939_v55, %v1941_v56 }
 0x2b1   : > { %v1943_v57 = vpop.f32.mrf.mxu1 }
 0x2b7   : > { %v1945_v58 = vpop.f32.mrf.mxu2 }
 0x2b8   : > { %v841_v20 = vmax.f32 %v1943_v57, %v1945_v58 }
 0x2b9   : > { %v731_v59 = vpop.f32.mrf.mxu1 }
 0x2bf   : > { %v796_v60 = vpop.f32.mrf.mxu2 }
 0x2c0   : > { %v844_v13 = vmax.f32 %v731_v59, %v796_v60 }
 0x2c1   : > { %v1947_v61 = vpop.f32.mrf.mxu1 }
 0x2c7   : > { %v1949_v62 = vpop.f32.mrf.mxu2 }
 0x2c8   : > { %v847_v18 = vmax.f32 %v1947_v61, %v1949_v62 }
 0x2c9   : > { %v737_v63 = vpop.f32.mrf.mxu1 }
 0x2cf   : > { %v802_v0 = vpop.f32.mrf.mxu2 }
 0x2d0   : > { %v850_v10 = vmax.f32 %v737_v63, %v802_v0 }
 0x2d1   : > { %v1951_v1 = vpop.f32.mrf.mxu1 }
 0x2d7   : > { %v1953_v2 = vpop.f32.mrf.mxu2 }
 0x2d8   : > { %v853_v3 = vmax.f32 %v1951_v1, %v1953_v2 }
 0x2d9   : > { %v743_v8 = vpop.f32.mrf.mxu1 }
 0x2da   : > { %854 = vmax.xlane.f32.xlu2 %v853_v3 }
 0x2df   : > { %v808_v9 = vpop.f32.mrf.mxu2 }
 0x2e0   : > { %v856_v16 = vmax.f32 %v743_v8, %v808_v9 }
 0x2e1   : > { %v1957_v11 = vpop.f32.mrf.mxu1 }
 0x2e2   : > { %851 = vmax.xlane.f32.xlu2 %v850_v10 }
 0x2e7   : > { %v1959_v12 = vpop.f32.mrf.mxu2 }
 0x2e8   : > { %v859_v14 = vmax.f32 %v1957_v11, %v1959_v12 }
 0x2ea   : > { %845 = vmax.xlane.f32.xlu2 %v844_v13  ;;  %860 = vmax.xlane.f32.xlu1 %v859_v14 }
 0x2f2   : > { %839 = vmax.xlane.f32.xlu2 %v838_v15  ;;  %857 = vmax.xlane.f32.xlu1 %v856_v16 }
 0x2fa   : > { %830 = vmax.xlane.f32.xlu2 %v829_v17  ;;  %848 = vmax.xlane.f32.xlu1 %v847_v18 }
 0x302   : > { %824 = vmax.xlane.f32.xlu2 %v823_v19  ;;  %842 = vmax.xlane.f32.xlu1 %v841_v20 }
 0x30a   : > { %833 = vmax.xlane.f32.xlu1 %v832_v21 }
 0x312   : > { %827 = vmax.xlane.f32.xlu1 %v826_v22 }
 0x31a   : > { %821 = vmax.xlane.f32.xlu1 %v820_v23 }
 0x322   : > { %818 = vmax.xlane.f32.xlu1 %v817_v24 }
 0x32a   : > { %815 = vmax.xlane.f32.xlu1 %v814_v25 }
 0x34d   : > { %v855_v26 = vpop.xlane.xlu2 %854 }
 0x355   : > { %v852_v27 = vpop.xlane.xlu2 %851 }
 0x356   : > { %v886_v28 = vsub.f32 %v737_v63, %v852_v27  ;;  %v887_v29 = vsub.f32 %v802_v0, %v852_v27 }
 0x358   : > { %v942_v30 = vmul.f32 1.442695, %v886_v28  ;;  %v944_v31 = vmul.f32 1.442695, %v887_v29  ;;  %v889_v28 = vsub.f32 %v1953_v2, %v855_v26 }
 0x35a   : > { %1486 = vpow2.f32 %v942_v30 }
 0x35b   : > { %1488 = vpow2.f32 %v944_v31 }
 0x35d   : > { %v846_v32 = vpop.xlane.xlu2 %845  ;;  %v861_v33 = vpop.xlane.xlu1 %860 }
 0x35e   : > { %v882_v34 = vsub.f32 %v731_v59, %v846_v32  ;;  %v883_v35 = vsub.f32 %v796_v60, %v846_v32  ;;  %v892_v21 = vsub.f32 %v1957_v11, %v861_v33  ;;  %v888_v11 = vsub.f32 %v1951_v1, %v855_v26 }
 0x35f   : > { %v948_v32 = vmul.f32 1.442695, %v889_v28 }
 0x360   : > { %v1983_v36 = vpop.eup %1486  ;;  %v934_v37 = vmul.f32 1.442695, %v882_v34  ;;  %v936_v54 = vmul.f32 1.442695, %v883_v35  ;;  %v946_v31 = vmul.f32 1.442695, %v888_v11 }
 0x361   : > { %v1985_v3 = vpop.eup %1488 }
 0x362   : > { %1490 = vpow2.f32 %v934_v37  ;;  %v994_v10 = vadd.f32 %v1985_v3, %v1983_v36 }
 0x363   : > { %1492 = vpow2.f32 %v936_v54 }
 0x364   : > { %995 = vadd.xlane.f32.xlu1 %v994_v10 }
 0x365   : > { %v840_v63 = vpop.xlane.xlu2 %839  ;;  %v858_v0 = vpop.xlane.xlu1 %857 }
 0x366   : > { %v878_v13 = vsub.f32 %v1939_v55, %v840_v63  ;;  %v879_v14 = vsub.f32 %v1941_v56, %v840_v63  ;;  %v890_v59 = vsub.f32 %v743_v8, %v858_v0  ;;  %v891_v60 = vsub.f32 %v808_v9, %v858_v0 }
 0x367   : > { %v893_v55 = vsub.f32 %v1959_v12, %v861_v33  ;;  %v954_v8 = vmul.f32 1.442695, %v892_v21 }
 0x368   : > { %v1991_v15 = vpop.eup %1490  ;;  %v926_v16 = vmul.f32 1.442695, %v878_v13  ;;  %v928_v17 = vmul.f32 1.442695, %v879_v14  ;;  %v950_v18 = vmul.f32 1.442695, %v890_v59 }
 0x369   : > { %v1993_v19 = vpop.eup %1492  ;;  %v952_v20 = vmul.f32 1.442695, %v891_v60  ;;  %v956_v9 = vmul.f32 1.442695, %v893_v55 }
 0x36a   : > { %1494 = vpow2.f32 %v926_v16  ;;  %v988_v22 = vadd.f32 %v1993_v19, %v1991_v15  ;;  %v837_v16 = vpop.xlane.xlu0 %836 }
 0x36b   : > { %1496 = vpow2.f32 %v928_v17 }
 0x36c   : > { %1498 = vpow2.f32 %v950_v18  ;;  %989 = vadd.xlane.f32.xlu1 %v988_v22 }
 0x36d   : > { %1500 = vpow2.f32 %v952_v20  ;;  %v849_v56 = vpop.xlane.xlu1 %848  ;;  %v831_v11 = vpop.xlane.xlu2 %830 }
 0x36e   : > { %1502 = vpow2.f32 %v954_v8  ;;  %v884_v1 = vsub.f32 %v1947_v61, %v849_v56  ;;  %v885_v35 = vsub.f32 %v1949_v62, %v849_v56 }
 0x36f   : > { %1504 = vpow2.f32 %v956_v9  ;;  %v877_v9 = vsub.f32 %v1935_v53, %v837_v16 }
 0x370   : > { %v1999_v23 = vpop.eup %1494  ;;  %1506 = vpow2.f32 %v946_v31  ;;  %v938_v2 = vmul.f32 1.442695, %v884_v1  ;;  %v940_v37 = vmul.f32 1.442695, %v885_v35 }
 0x371   : > { %v2001_v24 = vpop.eup %1496  ;;  %1508 = vpow2.f32 %v948_v32 }
 0x372   : > { %v2003_v25 = vpop.eup %1498  ;;  %v982_v27 = vadd.f32 %v2001_v24, %v1999_v23  ;;  %1510 = vpow2.f32 %v938_v2 }
 0x373   : > { %v2008_v12 = vpop.eup %1500  ;;  %1512 = vpow2.f32 %v940_v37 }
 0x374   : > { %983 = vadd.xlane.f32.xlu1 %v982_v27  ;;  %v1000_v29 = vadd.f32 %v2008_v12, %v2003_v25  ;;  %v2013_v33 = vpop.eup %1502 }
 0x375   : > { %v843_v30 = vpop.xlane.xlu1 %842  ;;  %v2016_v34 = vpop.eup %1504 }
 0x376   : > { %1001 = vadd.xlane.f32.xlu2 %v1000_v29  ;;  %v1003_v26 = vadd.f32 %v2016_v34, %v2013_v33  ;;  %v2023_v0 = vpop.eup %1506  ;;  %v880_v61 = vsub.f32 %v1943_v57, %v843_v30  ;;  %v881_v59 = vsub.f32 %v1945_v58, %v843_v30  ;;  %v876_v58 = vsub.f32 %v1933_v52, %v837_v16 }
 0x377   : > { %v2026_v14 = vpop.eup %1508  ;;  %v924_v52 = vmul.f32 1.442695, %v877_v9 }
 0x378   : > { %v930_v60 = vmul.f32 1.442695, %v880_v61  ;;  %v2031_v18 = vpop.eup %1510 }
 0x379   : > { %v2035_v21 = vpop.eup %1512 }
 0x37a   : > { %v991_v27 = vadd.f32 %v2035_v21, %v2031_v18 }
 0x37d   : > { %v834_v54 = vpop.xlane.xlu1 %833 }
 0x37e   : > { %1004 = vadd.xlane.f32.xlu2 %v1003_v26  ;;  %v874_v10 = vsub.f32 %v1929_v50, %v834_v54  ;;  %v875_v63 = vsub.f32 %v1931_v51, %v834_v54  ;;  %v997_v50 = vadd.f32 %v2026_v14, %v2023_v0  ;;  %v932_v51 = vmul.f32 1.442695, %v881_v59  ;;  %v825_v54 = vpop.xlane.xlu2 %824 }
 0x37f   : > { %v872_v26 = vsub.f32 %v1925_v48, %v831_v11  ;;  %v868_v59 = vsub.f32 %v1917_v44, %v825_v54 }
 0x380   : > { %v918_v13 = vmul.f32 1.442695, %v874_v10  ;;  %v920_v62 = vmul.f32 1.442695, %v875_v63 }
 0x381   : > { %v914_v61 = vmul.f32 1.442695, %v872_v26  ;;  %v906_v16 = vmul.f32 1.442695, %v868_v59 }
 0x382   : > { %1514 = vpow2.f32 %v918_v13 }
 0x383   : > { %1516 = vpow2.f32 %v920_v62 }
 0x384   : > { %1518 = vpow2.f32 %v930_v60 }
 0x385   : > { %v828_v17 = vpop.xlane.xlu1 %827  ;;  %1520 = vpow2.f32 %v932_v51 }
 0x386   : > { %998 = vadd.xlane.f32.xlu2 %v997_v50  ;;  %v870_v57 = vsub.f32 %v1921_v46, %v828_v17  ;;  %v871_v20 = vsub.f32 %v1923_v47, %v828_v17  ;;  %v922_v47 = vmul.f32 1.442695, %v876_v58 }
 0x388   : > { %v2037_v22 = vpop.eup %1514  ;;  %v910_v55 = vmul.f32 1.442695, %v870_v57  ;;  %v912_v56 = vmul.f32 1.442695, %v871_v20 }
 0x389   : > { %v2040_v8 = vpop.eup %1516 }
 0x38a   : > { %1522 = vpow2.f32 %v910_v55  ;;  %v976_v46 = vadd.f32 %v2040_v8, %v2037_v22  ;;  %v2047_v29 = vpop.eup %1518 }
 0x38b   : > { %1524 = vpow2.f32 %v912_v56  ;;  %v2051_v31 = vpop.eup %1520 }
 0x38c   : > { %977 = vadd.xlane.f32.xlu1 %v976_v46  ;;  %1526 = vpow2.f32 %v922_v47 }
 0x38d   : > { %v822_v28 = vpop.xlane.xlu1 %821  ;;  %1528 = vpow2.f32 %v924_v52 }
 0x38e   : > { %992 = vadd.xlane.f32.xlu2 %v991_v27  ;;  %v866_v30 = vsub.f32 %v1913_v42, %v822_v28  ;;  %v867_v53 = vsub.f32 %v1915_v43, %v822_v28  ;;  %v873_v42 = vsub.f32 %v1927_v49, %v831_v11  ;;  %v985_v43 = vadd.f32 %v2051_v31, %v2047_v29 }
 0x38f   : > { %v869_v49 = vsub.f32 %v1919_v45, %v825_v54 }
 0x390   : > { %v2053_v32 = vpop.eup %1522  ;;  %v902_v1 = vmul.f32 1.442695, %v866_v30  ;;  %v904_v35 = vmul.f32 1.442695, %v867_v53  ;;  %v916_v48 = vmul.f32 1.442695, %v873_v42 }
 0x391   : > { %v2055_v2 = vpop.eup %1524  ;;  %v908_v17 = vmul.f32 1.442695, %v869_v49 }
 0x392   : > { %1530 = vpow2.f32 %v902_v1  ;;  %v970_v37 = vadd.f32 %v2055_v2, %v2053_v32  ;;  %v2063_v63 = vpop.eup %1526 }
 0x393   : > { %1532 = vpow2.f32 %v904_v35  ;;  %v2065_v13 = vpop.eup %1528 }
 0x394   : > { %971 = vadd.xlane.f32.xlu1 %v970_v37  ;;  %1534 = vpow2.f32 %v914_v61  ;;  %v979_v51 = vadd.f32 %v2065_v13, %v2063_v63 }
 0x395   : > { %v819_v10 = vpop.xlane.xlu1 %818  ;;  %1536 = vpow2.f32 %v916_v48 }
 0x396   : > { %986 = vadd.xlane.f32.xlu2 %v985_v43  ;;  %1538 = vpow2.f32 %v906_v16  ;;  %v864_v9 = vsub.f32 %v1909_v40, %v819_v10  ;;  %v865_v46 = vsub.f32 %v1911_v41, %v819_v10 }
 0x397   : > { %1540 = vpow2.f32 %v908_v17 }
 0x398   : > { %v2067_v62 = vpop.eup %1530  ;;  %v900_v27 = vmul.f32 1.442695, %v865_v46 }
 0x399   : > { %v2070_v60 = vpop.eup %1532 }
 0x39a   : > { %v964_v50 = vadd.f32 %v2070_v60, %v2067_v62  ;;  %v2079_v58 = vpop.eup %1534 }
 0x39b   : > { %v2081_v56 = vpop.eup %1536 }
 0x39c   : > { %965 = vadd.xlane.f32.xlu1 %v964_v50  ;;  %v973_v11 = vadd.f32 %v2081_v56, %v2079_v58 }
 0x39d   : > { %v816_v57 = vpop.xlane.xlu1 %815 }
 0x39e   : > { %980 = vadd.xlane.f32.xlu2 %v979_v51  ;;  %v862_v20 = vsub.f32 %v1905_v38, %v816_v57  ;;  %v863_v44 = vsub.f32 %v1907_v39, %v816_v57  ;;  %v2087_v38 = vpop.eup %1538  ;;  %v898_v39 = vmul.f32 1.442695, %v864_v9 }
 0x39f   : > { %v2089_v47 = vpop.eup %1540 }
 0x3a0   : > { %v894_v45 = vmul.f32 1.442695, %v862_v20  ;;  %v896_v55 = vmul.f32 1.442695, %v863_v44  ;;  %v967_v41 = vadd.f32 %v2089_v47, %v2087_v38 }
 0x3a2   : > { %1542 = vpow2.f32 %v894_v45 }
 0x3a3   : > { %1544 = vpow2.f32 %v896_v55 }
 0x3a4   : > { %1546 = vpow2.f32 %v898_v39 }
 0x3a5   : > { %1548 = vpow2.f32 %v900_v27 }
 0x3a6   : > { %974 = vadd.xlane.f32.xlu2 %v973_v11 }
 0x3a8   : > { %v2091_v52 = vpop.eup %1542 }
 0x3a9   : > { %v2093_v28 = vpop.eup %1544 }
 0x3aa   : > { %v958_v40 = vadd.f32 %v2093_v28, %v2091_v52  ;;  %v2099_v30 = vpop.eup %1546 }
 0x3ab   : > { %v2101_v53 = vpop.eup %1548 }
 0x3ac   : > { %959 = vadd.xlane.f32.xlu1 %v958_v40  ;;  %v961_v1 = vadd.f32 %v2101_v53, %v2099_v30 }
 0x3ae   : > { %968 = vadd.xlane.f32.xlu2 %v967_v41 }
 0x3b6   : > { %962 = vadd.xlane.f32.xlu2 %v961_v1 }
 0x3d7   : > { %v996_v26 = vpop.xlane.xlu1 %995 }
 0x3df   : > { %v990_v43 = vpop.xlane.xlu1 %989 }
 0x3e7   : > { %v984_v17 = vpop.xlane.xlu1 %983 }
 0x3e9   : > { %v1002_v35 = vpop.xlane.xlu2 %1001 }
 0x3ea   : > { %1550 = vrcp.f32 %v1002_v35 }
 0x3f0   : > { %v1551_v42 = vpop.eup %1550 }
 0x3f1   : > { %v1005_v37 = vpop.xlane.xlu2 %1004  ;;  %v1036_v54 = vmul.f32 %v1551_v42, %v1002_v35 }
 0x3f2   : > { %1552 = vrcp.f32 %v1005_v37 }
 0x3f3   : > { %1554 = vrcp.f32 %v996_v26  ;;  %v1052_v59 = vsub.f32 2.0, %v1036_v54 }
 0x3f5   : > { %v1068_v44 = vmul.f32 %v1551_v42, %v1052_v59 }
 0x3f7   : > { %v1098_v39 = vmul.f32 %v2003_v25, %v1068_v44  ;;  %v2112_v27 = vmul.f32 %v2008_v12, %v1068_v44 }
 0x3f8   : > { %v1553_v10 = vpop.eup %1552 }
 0x3f9   : > { %v1037_v61 = vmul.f32 %v1553_v10, %v1005_v37  ;;  %v999_v48 = vpop.xlane.xlu2 %998  ;;  %v1555_v50 = vpop.eup %1554 }
 0x3fa   : > { %1556 = vrcp.f32 %v999_v48  ;;  %v1034_v51 = vmul.f32 %v1555_v50, %v996_v26 }
 0x3fb   : > { %v1053_v49 = vsub.f32 2.0, %v1037_v61  ;;  %1558 = vrcp.f32 %v990_v43 }
 0x3fc   : > { %v1050_v46 = vsub.f32 2.0, %v1034_v51 }
 0x3fd   : > { %v1069_v16 = vmul.f32 %v1553_v10, %v1053_v49 }
 0x3fe   : > { %v1066_v26 = vmul.f32 %v1555_v50, %v1050_v46 }
 0x3ff   : > { %v1100_v57 = vmul.f32 %v2013_v33, %v1069_v16  ;;  %v2107_v20 = vmul.f32 %v2016_v34, %v1069_v16  ;;  %v978_v41 = vpop.xlane.xlu1 %977 }
 0x400   : > { %v1557_v45 = vpop.eup %1556  ;;  %v1094_v10 = vmul.f32 %v1983_v36, %v1066_v26 }
 0x401   : > { %v1035_v55 = vmul.f32 %v1557_v45, %v999_v48  ;;  %1110 = vmatpush.xpose.msra.mxu3 %v1100_v57  ;;  %1139 = vmatpush.xpose.msrb.mxu0 %v2107_v20  ;;  %v993_v9 = vpop.xlane.xlu2 %992  ;;  %v1559_v40 = vpop.eup %1558 }
 0x402   : > { %1560 = vrcp.f32 %v993_v9  ;;  %v1032_v34 = vmul.f32 %v1559_v40, %v990_v43  ;;  %v2122_v43 = vmul.f32 %v1985_v3, %v1066_v26 }
 0x403   : > { %v1051_v11 = vsub.f32 2.0, %v1035_v55  ;;  %1562 = vrcp.f32 %v984_v17 }
 0x404   : > { %v1048_v12 = vsub.f32 2.0, %v1032_v34 }
 0x405   : > { %1111 = vmatpush.xpose.msra.mxu3 %v1098_v39  ;;  %1140 = vmatpush.xpose.msrb.mxu0 %v2112_v27  ;;  %v1067_v33 = vmul.f32 %v1557_v45, %v1051_v11 }
 0x406   : > { %v1064_v49 = vmul.f32 %v1559_v40, %v1048_v12 }
 0x407   : > { %v1096_v1 = vmul.f32 %v2023_v0, %v1067_v33  ;;  %v2117_v35 = vmul.f32 %v2026_v14, %v1067_v33  ;;  %v972_v51 = vpop.xlane.xlu1 %971 }
 0x408   : > { %v1561_v37 = vpop.eup %1560  ;;  %v1090_v44 = vmul.f32 %v1991_v15, %v1064_v49 }
 0x409   : > { %v1033_v42 = vmul.f32 %v1561_v37, %v993_v9  ;;  %1112 = vmatpush.xpose.msra.mxu3 %v1096_v1  ;;  %1141 = vmatpush.xpose.msrb.mxu0 %v2117_v35  ;;  %v987_v25 = vpop.xlane.xlu2 %986  ;;  %v1563_v61 = vpop.eup %1562 }
 0x40a   : > { %1564 = vrcp.f32 %v987_v25  ;;  %v1030_v14 = vmul.f32 %v1563_v61, %v984_v17  ;;  %v2132_v17 = vmul.f32 %v1993_v19, %v1064_v49 }
 0x40b   : > { %v1049_v54 = vsub.f32 2.0, %v1033_v42  ;;  %1566 = vrcp.f32 %v978_v41 }
 0x40c   : > { %v1046_v3 = vsub.f32 2.0, %v1030_v14 }
 0x40d   : > { %1113 = vmatpush.xpose.msra.mxu3 %v1094_v10  ;;  %1142 = vmatpush.xpose.msrb.mxu0 %v2122_v43  ;;  %v1065_v0 = vmul.f32 %v1561_v37, %v1049_v54 }
 0x40e   : > { %v1062_v46 = vmul.f32 %v1563_v61, %v1046_v3 }
 0x40f   : > { %v1092_v48 = vmul.f32 %v2031_v18, %v1065_v0  ;;  %v2127_v59 = vmul.f32 %v2035_v21, %v1065_v0  ;;  %v966_v33 = vpop.xlane.xlu1 %965 }
 0x410   : > { %v1565_v50 = vpop.eup %1564  ;;  %v1086_v34 = vmul.f32 %v1999_v23, %v1062_v46 }
 0x411   : > { %v1031_v16 = vmul.f32 %v1565_v50, %v987_v25  ;;  %v981_v36 = vpop.xlane.xlu2 %980  ;;  %1114 = vmatpush.xpose.msra.mxu3 %v1092_v48  ;;  %1143 = vmatpush.xpose.msrb.mxu0 %v2127_v59  ;;  %v1567_v18 = vpop.eup %1566 }
 0x412   : > { %1568 = vrcp.f32 %v981_v36  ;;  %v1028_v45 = vmul.f32 %v1567_v18, %v978_v41  ;;  %v2142_v41 = vmul.f32 %v2001_v24, %v1062_v46 }
 0x413   : > { %v1047_v57 = vsub.f32 2.0, %v1031_v16  ;;  %1570 = vrcp.f32 %v972_v51 }
 0x414   : > { %v1044_v15 = vsub.f32 2.0, %v1028_v45 }
 0x415   : > { %1115 = vmatpush.xpose.msra.mxu3 %v1090_v44  ;;  %1144 = vmatpush.xpose.msrb.mxu0 %v2132_v17  ;;  %v1063_v21 = vmul.f32 %v1565_v50, %v1047_v57 }
 0x416   : > { %v1060_v42 = vmul.f32 %v1567_v18, %v1044_v15 }
 0x417   : > { %v1088_v55 = vmul.f32 %v2047_v29, %v1063_v21  ;;  %v2137_v9 = vmul.f32 %v2051_v31, %v1063_v21 }
 0x418   : > { %v1569_v11 = vpop.eup %1568  ;;  %v1082_v61 = vmul.f32 %v2037_v22, %v1060_v42  ;;  %v2152_v0 = vmul.f32 %v2040_v8, %v1060_v42 }
 0x419   : > { %v1029_v39 = vmul.f32 %v1569_v11, %v981_v36  ;;  %v975_v40 = vpop.xlane.xlu2 %974  ;;  %1116 = vmatpush.xpose.msra.mxu3 %v1088_v55  ;;  %1145 = vmatpush.xpose.msrb.mxu0 %v2137_v9  ;;  %v1571_v29 = vpop.eup %1570 }
 0x41a   : > { %1572 = vrcp.f32 %v975_v40  ;;  %v1026_v1 = vmul.f32 %v1571_v29, %v972_v51 }
 0x41b   : > { %v1045_v19 = vsub.f32 2.0, %v1029_v39  ;;  %1574 = vrcp.f32 %v966_v33 }
 0x41c   : > { %v1042_v23 = vsub.f32 2.0, %v1026_v1 }
 0x41d   : > { %1117 = vmatpush.xpose.msra.mxu3 %v1086_v34  ;;  %1146 = vmatpush.xpose.msrb.mxu0 %v2142_v41  ;;  %v1061_v31 = vmul.f32 %v1569_v11, %v1045_v19  ;;  %v1102_v34 = vld [vmem:[#allocation2 + $0x30] sm:$0xff] }
 0x41e   : > { %v1058_v50 = vmul.f32 %v1571_v29, %v1042_v23 }
 0x41f   : > { %v1084_v26 = vmul.f32 %v2063_v63, %v1061_v31  ;;  %v2147_v37 = vmul.f32 %v2065_v13, %v1061_v31  ;;  %v960_v10 = vpop.xlane.xlu1 %959 }
 0x420   : > { %v1573_v25 = vpop.eup %1572  ;;  %v1078_v3 = vmul.f32 %v2053_v32, %v1058_v50  ;;  %v1079_v57 = vmul.f32 %v2055_v2, %v1058_v50 }
 0x421   : > { %v1027_v12 = vmul.f32 %v1573_v25, %v975_v40  ;;  %v969_v54 = vpop.xlane.xlu2 %968  ;;  %1118 = vmatpush.xpose.msra.mxu3 %v1084_v26  ;;  %1147 = vmatpush.xpose.msrb.mxu0 %v2147_v37  ;;  %v1575_v63 = vpop.eup %1574 }
 0x422   : > { %1576 = vrcp.f32 %v969_v54  ;;  %v1024_v14 = vmul.f32 %v1575_v63, %v966_v33 }
 0x423   : > { %v1043_v24 = vsub.f32 2.0, %v1027_v12  ;;  %1578 = vrcp.f32 %v960_v10 }
 0x424   : > { %v1040_v22 = vsub.f32 2.0, %v1024_v14 }
 0x425   : > { %1119 = vmatpush.xpose.msra.mxu3 %v1082_v61  ;;  %1148 = vmatpush.xpose.msrb.mxu0 %v2152_v0  ;;  %v1059_v13 = vmul.f32 %v1573_v25, %v1043_v24 }
 0x426   : > { %v1056_v45 = vmul.f32 %v1575_v63, %v1040_v22 }
 0x427   : > { %v1080_v48 = vmul.f32 %v2079_v58, %v1059_v13  ;;  %v1081_v49 = vmul.f32 %v2081_v56, %v1059_v13 }
 0x428   : > { %v1577_v16 = vpop.eup %1576  ;;  %v1074_v32 = vmul.f32 %v2067_v62, %v1056_v45  ;;  %v1075_v2 = vmul.f32 %v2070_v60, %v1056_v45  ;;  %v1103_v62 = vld [vmem:[#allocation2] sm:$0xff]  ;;  %v1104_v60 = vld [vmem:[#allocation2 + $0x18] sm:$0xff] }
 0x429   : > { %v1025_v51 = vmul.f32 %v1577_v16, %v969_v54  ;;  %v963_v36 = vpop.xlane.xlu2 %962  ;;  %1120 = vmatpush.xpose.msra.mxu3 %v1080_v48  ;;  %1149 = vmatpush.xpose.msrb.mxu0 %v1081_v49  ;;  %v1579_v44 = vpop.eup %1578 }
 0x42a   : > { %1580 = vrcp.f32 %v963_v36  ;;  %v1022_v58 = vmul.f32 %v1579_v44, %v960_v10 }
 0x42b   : > { %v1041_v8 = vsub.f32 2.0, %v1025_v51 }
 0x42c   : > { %v1038_v11 = vsub.f32 2.0, %v1022_v58 }
 0x42d   : > { %1121 = vmatpush.xpose.msra.mxu3 %v1078_v3  ;;  %1150 = vmatpush.xpose.msrb.mxu0 %v1079_v57  ;;  %v1057_v18 = vmul.f32 %v1577_v16, %v1041_v8 }
 0x42e   : > { %v1054_v15 = vmul.f32 %v1579_v44, %v1038_v11 }
 0x42f   : > { %v1076_v56 = vmul.f32 %v2087_v38, %v1057_v18  ;;  %v1077_v21 = vmul.f32 %v2089_v47, %v1057_v18 }
 0x430   : > { %v1581_v55 = vpop.eup %1580  ;;  %v1070_v47 = vmul.f32 %v2091_v52, %v1054_v15  ;;  %v1071_v33 = vmul.f32 %v2093_v28, %v1054_v15  ;;  %v1106_v52 = vld [vmem:[#allocation2 + $0x8] sm:$0xff] }
 0x431   : > { %v1023_v46 = vmul.f32 %v1581_v55, %v963_v36  ;;  %1122 = vmatpush.xpose.msra.mxu3 %v1076_v56  ;;  %1151 = vmatpush.xpose.msrb.mxu0 %v1077_v21  ;;  %v1108_v28 = vld [vmem:[#allocation2 + $0x28] sm:$0xff] }
 0x433   : > { %v1039_v39 = vsub.f32 2.0, %v1023_v46 }
 0x435   : > { %v1055_v40 = vmul.f32 %v1581_v55, %v1039_v39  ;;  %1123 = vmatpush.xpose.msra.mxu3 %v1074_v32  ;;  %1152 = vmatpush.xpose.msrb.mxu0 %v1075_v2 }
 0x437   : > { %v1072_v19 = vmul.f32 %v2099_v30, %v1055_v40  ;;  %v1073_v38 = vmul.f32 %v2101_v53, %v1055_v40  ;;  %v1105_v30 = vld [vmem:[#allocation2 + $0x10] sm:$0xff]  ;;  %v1107_v53 = vld [vmem:[#allocation2 + $0x20] sm:$0xff] }
 0x439   : > { %1124 = vmatpush.xpose.msra.mxu3 %v1072_v19  ;;  %1153 = vmatpush.xpose.msrb.mxu0 %v1073_v38 }
 0x43d   : > { %1125 = vmatpush.xpose.msra.mxu3 %v1070_v47  ;;  %1154 = vmatpush.xpose.msrb.mxu0 %v1071_v33 }
 0x440   : > { %1126 = vmatmul.f32.vlgmr.msra.gmra.mxu3 %v1102_v34  ;;  %1155 = vmatmul.f32.vlgmr.msrb.gmra.mxu0 %v1103_v62 }
 0x441   : > { %1409 = vmatpush.xpose.msrb.mxu3 %v2107_v20  ;;  %v1109_v20 = vld [vmem:[#allocation2 + $0x38] sm:$0xff] }
 0x445   : > { %1410 = vmatpush.xpose.msrb.mxu3 %v2112_v27 }
 0x448   : > { %1129 = vmatmul.f32.gmra.mxu3 %v1104_v60  ;;  %1158 = vmatmul.f32.gmra.mxu0 %v1105_v30 }
 0x449   : > { %1411 = vmatpush.xpose.msrb.mxu3 %v2117_v35 }
 0x44d   : > { %1412 = vmatpush.xpose.msrb.mxu3 %v2122_v43  ;;  %v1169_v43 = vstv %s1168_s22 }
 0x450   : > { %1132 = vmatmul.f32.gmra.mxu3 %v1106_v52 }
 0x451   : > { %1413 = vmatpush.xpose.msrb.mxu3 %v2127_v59 }
 0x455   : > { %1414 = vmatpush.xpose.msrb.mxu3 %v2132_v17 }
 0x458   : > { %1135 = vmatmul.f32.gmra.mxu3 %v1108_v28 }
 0x459   : > { %1415 = vmatpush.xpose.msrb.mxu3 %v2137_v9 }
 0x45d   : > { %1416 = vmatpush.xpose.msrb.mxu3 %v2142_v41 }
 0x461   : > { %1417 = vmatpush.xpose.msrb.mxu3 %v2147_v37 }
 0x465   : > { %1418 = vmatpush.xpose.msrb.mxu3 %v2152_v0 }
 0x469   : > { %1419 = vmatpush.xpose.msrb.mxu3 %v1081_v49 }
 0x46d   : > { %1420 = vmatpush.xpose.msrb.mxu3 %v1079_v57 }
 0x471   : > { %1421 = vmatpush.xpose.msrb.mxu3 %v1077_v21 }
 0x475   : > { %1422 = vmatpush.xpose.msrb.mxu3 %v1075_v2 }
 0x479   : > { %1423 = vmatpush.xpose.msrb.mxu3 %v1073_v38 }
 0x47d   : > { %1424 = vmatpush.xpose.msrb.mxu3 %v1071_v33 }
 0x480   : > { %1161 = vmatmul.f32.vlgmr.msrb.gmra.mxu3 %v1107_v53 }
 0x488   : > { %1164 = vmatmul.f32.gmra.mxu3 %v1109_v20 }
 0x4bd   : > { %v1156_v27 = vpop.f32.mrf.mxu0 }
 0x4c3   : > { %v1127_v35 = vpop.f32.mrf.mxu3 }
 0x4c4   : > { %v1157_v59 = vadd.f32 %v1156_v27, %v1127_v35 }
 0x4c5   : > { %v1159_v41 = vpop.f32.mrf.mxu0 }
 0x4c6   : > { %v1170_v17 = vmul.f32 %v1169_v43, %v1157_v59 }
 0x4c8   : > { %v1174_v9 = vadd.f32 %v1170_v17, %v1752_v4 }
 0x4ca   : > { %1178 = vst [vmem:[%s1779_s26] sm:$0xff] %v1174_v9 }
 0x4cb   : > { %v1130_v29 = vpop.f32.mrf.mxu3 }
 0x4cc   : > { %v1160_v31 = vadd.f32 %v1159_v41, %v1130_v29 }
 0x4ce   : > { %v1171_v1 = vmul.f32 %v1169_v43, %v1160_v31 }
 0x4d0   : > { %v1175_v26 = vadd.f32 %v1171_v1, %v1754_v5 }
 0x4d1   : > { %v1227_v5 = vld [vmem:[%s1779_s26] sm:$0xff] (%p1730_p6) }
 0x4d2   : > { %1179 = vst [vmem:[%s1779_s26 + $0x8] sm:$0xff] %v1175_v26 }
 0x4d3   : > { %v1133_v37 = vpop.f32.mrf.mxu3  ;;  %1228 = vst [vmem:[%s1192_s14] sm:$0xff] (%p1730_p6), %v1227_v5 }
 0x4db   : > { %v1136_v42 = vpop.f32.mrf.mxu3 }
 0x503   : > { %v1162_v25 = vpop.f32.mrf.mxu3 }
 0x504   : > { %v1163_v12 = vadd.f32 %v1162_v25, %v1133_v37 }
 0x506   : > { %v1172_v54 = vmul.f32 %v1169_v43, %v1163_v12 }
 0x508   : > { %v1176_v23 = vadd.f32 %v1172_v54, %v1756_v6  ;;  %v1229_v6 = vld [vmem:[%s1779_s26 + $0x8] sm:$0xff] (%p1730_p6) }
 0x509   : > { %1230 = vst [vmem:[%s1192_s14 + $0x10] sm:$0xff] (%p1730_p6), %v1229_v6 }
 0x50a   : > { %1180 = vst [vmem:[%s1779_s26 + $0x10] sm:$0xff] %v1176_v23 }
 0x50b   : > { %v1165_v24 = vpop.f32.mrf.mxu3 }
 0x50c   : > { %v1166_v10 = vadd.f32 %v1165_v24, %v1136_v42 }
 0x50e   : > { %v1173_v4 = vmul.f32 %v1169_v43, %v1166_v10  ;;  %1188 = sbr.rel (!%p1730_p6) target bundleno = 1307 (0x51b), region = 94 }
 0x510   : > { %v1177_v61 = vadd.f32 %v1173_v4, %v1758_v7 }
 0x511   : > { %v1231_v7 = vld [vmem:[%s1779_s26 + $0x10] sm:$0xff] (%p1730_p6) }
 0x512   : > { %1181 = vst [vmem:[%s1779_s26 + $0x18] sm:$0xff] %v1177_v61 }
 0x513   : > { %1232 = vst [vmem:[%s1192_s14 + $0x20] sm:$0xff] %v1231_v7 }
 0x519   : > { %v1233_v0 = vld [vmem:[%s1779_s26 + $0x18] sm:$0xff] }
 0x51a   : > { %1234 = vst [vmem:[%s1192_s14 + $0x30] sm:$0xff] %v1233_v0 }
 0x51b PF: > { %s18_s9 = sadd.s32 1, %s1636_s9   ;;  %s2226_s26 = smov %s1616_s27 }
 0x51c   : > { %p15_p0 = scmp.ge.s32.totalorder %s18_s9, 6   ;;  %s2227_s27 = smov %s1738_s17 }
 0x51d   : > { %s2228_s28 = smov %s1628_s30  ;;  %s2229_s29 = smov %s1632_s8 }
 0x51e   : > { %s2230_s30 = smov %s2233_s6  ;;  %s2231_s8 = smov %s2237_s10 }
 0x51f   :  { %17 = sbr.rel (!%p15_p0) target bundleno = 6 (0x6), region = 166 }

</bundles_post_ra>
